<compile_context>
chip_gen: v6e
topology: v6e:2x2x1
jax: 0.10.0
libtpu: 0.0.40
codegen_flags: <defaults>
</compile_context>

<pallas_src>
import math

import jax
import jax.numpy as jnp
from jax.experimental import pallas as pl
from jax.experimental.pallas import tpu as pltpu


def _cosine_matmul_kernel(x_ref, w_ref, o_ref):
    # x_ref: (TR, K)  interleaved [A*cosB, A*sinB] columns (K = 2*G)
    # w_ref: (K, L)   block-diagonal [cos(w t); -sin(w t)] expansion (resident)
    # o_ref: (TR, L)  lane-dense output tile (L = G*J)
    # One MXU matmul; otherwise the kernel is pure HBM writeback.
    o_ref[...] = jnp.dot(x_ref[...], w_ref[...],
                         preferred_element_type=jnp.float32)


def cosine_model_forward(Amn, Bmn, t, omega):
    """Pallas implementation of CosineModel.forward.

    Amn, Bmn: (n_rows, n_cols) float32
    t:        (J,) float32
    returns:  (n_rows, n_cols, J) float32
    """
    n_rows, n_cols = Amn.shape
    (J,) = t.shape
    R = n_rows * n_cols

    omega = jnp.float32(omega)
    A = Amn.reshape(R).astype(jnp.float32)
    B = Bmn.reshape(R).astype(jnp.float32)
    tf = t.astype(jnp.float32)

    # Tiny precompute (R + J transcendentals instead of R*J).
    ac = A * jnp.cos(B)                 # (R,)
    as_ = A * jnp.sin(B)                # (R,)
    ct = jnp.cos(omega * tf)            # (J,)
    st = jnp.sin(omega * tf)            # (J,)

    # Lane folding: pack G = 128 // J consecutive (m, n) rows into the 128-lane
    # axis so every output store is an unmasked full-lane vst.
    if J < 128 and 128 % J == 0:
        G = 128 // J
    else:
        # TODO(synk): for large J not a multiple of 128, padding J (and ct/st)
        # up to the next multiple of 128 would keep stores unmasked at a few %
        # extra writes; simple full-J fallback kept here.
        G = 1
    K = 2 * G
    L = G * J

    R_fold = pl.cdiv(R, G)
    R_pad = R_fold * G

    # X (R_fold, K): interleave [ac_g, as_g] for the G rows folded per out row.
    X = jnp.stack([ac, as_], axis=-1)                # (R, 2)
    if R_pad != R:
        X = jnp.pad(X, ((0, R_pad - R), (0, 0)))     # tiny input-side pad only
    X = X.reshape(R_fold, K)

    # W (K, L): row 2g carries cos(omega t) on lanes [g*J, (g+1)*J), row 2g+1
    # carries -sin(omega t) there; zero elsewhere.
    lane = jnp.arange(L)
    mask = (lane[None, :] // J) == jnp.arange(G)[:, None]       # (G, L)
    ct_t = jnp.tile(ct, G)                                      # (L,)
    st_t = jnp.tile(st, G)
    Wc = jnp.where(mask, ct_t[None, :], jnp.float32(0.0))
    Ws = jnp.where(mask, -st_t[None, :], jnp.float32(0.0))
    W = jnp.stack([Wc, Ws], axis=1).reshape(K, L).astype(jnp.float32)

    # Row tiling: ~4 MiB f32 output tiles; double-buffered this stays under
    # v5e's 16 MiB scoped-VMEM default (and v6e/v7x's 32 MiB).
    TILE_BYTES = 4 * 1024 * 1024
    tr = max(8, (TILE_BYTES // (4 * L)) // 8 * 8)
    if R_fold <= tr:
        TR = R_fold            # single block covering the full (possibly <8) extent
    else:
        TR = tr                # multiple of 8; partial last block masked by Pallas
    num_tiles = pl.cdiv(R_fold, TR)

    cost = pl.CostEstimate(
        flops=2 * R_fold * L * K,
        transcendentals=0,
        bytes_accessed=4 * (R_fold * L + R_fold * K + K * L),
    )

    out_fold = pl.pallas_call(
        _cosine_matmul_kernel,
        out_shape=jax.ShapeDtypeStruct((R_fold, L), jnp.float32),
        grid=(num_tiles,),
        in_specs=[
            pl.BlockSpec((TR, K), lambda i: (i, 0)),
            pl.BlockSpec((K, L), lambda i: (0, 0)),   # constant block -> fetched once
        ],
        out_specs=pl.BlockSpec((TR, L), lambda i: (i, 0)),
        compiler_params=pltpu.CompilerParams(
            dimension_semantics=("parallel",),
            vmem_limit_bytes=32 * 1024 * 1024,
        ),
        cost_estimate=cost,
    )(X, W)

    # (R_fold, G*J) -> (R_pad, J) is a free row-major reshape; a slice is only
    # needed in the rare R % G != 0 case (demo shapes divide exactly).
    out = out_fold.reshape(R_pad, J)
    if R_pad != R:
        out = out[:R]
    return out.reshape(n_rows, n_cols, J)


if __name__ == "__main__":
    # Small shapes consistent with the module.
    n_rows, n_cols, J = 4, 8, 16
    omega = 2.0 * math.pi * 0.5  # arbitrary fixed angular frequency

    key = jax.random.PRNGKey(0)
    k_a, k_b, k_t = jax.random.split(key, 3)

    # Deterministic parameter init mirroring the PyTorch __init__:
    #   Amn = |randn * 0.1|,  Bmn = rand * 2*pi
    Amn = jnp.abs(jax.random.normal(k_a, (n_rows, n_cols), jnp.float32) * 0.1)
    Bmn = jax.random.uniform(k_b, (n_rows, n_cols), jnp.float32) * 2.0 * math.pi

    # Example time vector t of length J.
    t = jax.random.uniform(k_t, (J,), jnp.float32) * 10.0

    out = cosine_model_forward(Amn, Bmn, t, omega)
    out = jax.block_until_ready(out)

    # Reference check in plain JAX (same math as the PyTorch forward).
    ref = Amn[:, :, None] * jnp.cos(omega * t[None, None, :] + Bmn[:, :, None])
    assert out.shape == (n_rows, n_cols, J)
    assert out.dtype == jnp.float32
    # Angle-addition + MXU formulation is not bit-identical to the direct
    # cos() form; observed error is far below this tolerance.
    assert jnp.allclose(out, ref, atol=2e-3, rtol=1e-2)

    print("KERNEL_OK")
</pallas_src>

<mosaic_0001>
module attributes {stable_mosaic.version = 11 : i64} {
  func.func @_cosine_matmul_kernel(%arg0: i32, %arg1: memref<4x16xf32, #tpu.memory_space<vmem>>, %arg2: memref<16x128xf32, #tpu.memory_space<vmem>>, %arg3: memref<4x128xf32, #tpu.memory_space<vmem>>) attributes {dimension_semantics = [#tpu.dimension_semantics<parallel>], iteration_bounds = array<i64: 1>, scalar_prefetch = 0 : i64, scratch_operands = 0 : i64, tpu.core_type = #tpu.core_type<tc>, window_params = [{transform_indices = @transform_0, window_bounds = array<i64: 4, 16>}, {pipeline_mode = #tpu.pipeline_mode<synchronous>, transform_indices = @transform_1, window_bounds = array<i64: 16, 128>}, {transform_indices = @transform_2, window_bounds = array<i64: 4, 128>}]} {
    %c0 = arith.constant 0 : index
    %c0_0 = arith.constant 0 : index
    %0 = vector.load %arg1[%c0, %c0_0] : memref<4x16xf32, #tpu.memory_space<vmem>>, vector<4x16xf32>
    %c0_1 = arith.constant 0 : index
    %c0_2 = arith.constant 0 : index
    %1 = vector.load %arg2[%c0_1, %c0_2] : memref<16x128xf32, #tpu.memory_space<vmem>>, vector<16x128xf32>
    %cst = arith.constant dense<0.000000e+00> : vector<4x128xf32>
    %2 = tpu.matmul %0, %1, %cst {dimension_numbers = #tpu.dot_dimension_numbers<[1], [0], [0], [1], [0, 0, 1, 1], [], []>} : vector<4x16xf32>, vector<16x128xf32>, vector<4x128xf32> -> vector<4x128xf32>
    %c0_3 = arith.constant 0 : index
    %c0_4 = arith.constant 0 : index
    %3 = vector.load %arg3[%c0_3, %c0_4] : memref<4x128xf32, #tpu.memory_space<vmem>>, vector<4x128xf32>
    tpu.vector_store %arg3[%c0_3, %c0_4], %2 {strides = array<i32>} : memref<4x128xf32, #tpu.memory_space<vmem>>, vector<4x128xf32>,
    return
  }
  func.func @transform_0(%arg0: i32) -> (i32, i32) {
    %c0_i32 = arith.constant 0 : i32
    %c0_i32_0 = arith.constant 0 : i32
    return %arg0, %c0_i32 : i32, i32
  }
  func.func @transform_1(%arg0: i32) -> (i32, i32) {
    %c0_i32 = arith.constant 0 : i32
    %c0_i32_0 = arith.constant 0 : i32
    %c0_i32_1 = arith.constant 0 : i32
    return %c0_i32, %c0_i32_0 : i32, i32
  }
  func.func @transform_2(%arg0: i32) -> (i32, i32) {
    %c0_i32 = arith.constant 0 : i32
    %c0_i32_0 = arith.constant 0 : i32
    return %arg0, %c0_i32 : i32, i32
  }
}

</mosaic_0001>

<bundles_post_ra>
// kernel: tpu_custom_call.1
= control target key start
LH: loop header
LB: loop body
LE: loop exit
PB: predicated region body
PF: predicated region fallthrough
CT: control target
= control target key end

     0   :  { %7 = vsyncpa [#allocation3], 0  ;;  %s247_s0 = inlined_call_operand.hbm [shape: f32[4,16], index: 0, kind: input, shape index: {}]   ;;  %s248_s1 = inlined_call_operand.hbm [shape: f32[16,128], index: 1, kind: input, shape index: {}]   ;;  %s249_s2 = inlined_call_operand.hbm [shape: f32[4,128], index: 2, kind: output, shape index: {}]  }
   0x1   :  { %8 = vsyncpa [#allocation6], 0 }
   0x2   :  { %9 = vsyncpa [#allocation4], 0  ;;  %s216_s9 = smov [#allocation2]   ;;  %s217_s11 = smov [#allocation5]  }
   0x3   :  { %s16_s10 = sshll.u32 %s216_s9, 4  ;;  %s25_s12 = sshll.u32 %s217_s11, 4  ;;  %s17_s10 = int_to_ptr.vmem [resolvable:$true] %s16_s10  ;;  %s26_s12 = int_to_ptr.vmem [resolvable:$true] %s25_s12 }
   0x4   :  { %s158_s13 = scalar_lea.vmem %s17_s10, 64  ;;  %p163_p1 = scmp.lt.s32.totalorder %s17_s10, %s17_s10 }
   0x5   :  { %p159_p0 = scmp.ne.s32.totalorder %s17_s10, %s158_s13  ;;  %p164_p2 = scmp.lt.s32.totalorder %s158_s13, %s158_s13 }
   0x7   :  { %p165_p3 = por %p164_p2, %p163_p1 }
   0x9   :  { %p166_p4 = pnand %p165_p3, %p159_p0 }
   0xb   :  { %169 = shalt.err (!%p166_p4)
}
   0xc   :  { %19 = dma.hbm_to_vmem [thread:$0]  %s247_s0, 64, %s17_s10, [#allocation3]  }
   0xd   :  { %s178_s16 = scalar_lea.vmem %s26_s12, 256  ;;  %p183_p6 = scmp.lt.s32.totalorder %s26_s12, %s26_s12 }
   0xe   :  { %p179_p5 = scmp.ne.s32.totalorder %s26_s12, %s178_s16  ;;  %p184_p7 = scmp.lt.s32.totalorder %s178_s16, %s178_s16 }
  0x10   :  { %p185_p8 = por %p184_p7, %p183_p6 }
  0x12   :  { %p186_p9 = pnand %p185_p8, %p179_p5 }
  0x14   :  { %189 = shalt.err (!%p186_p9)
}
  0x15   :  { %s218_s17 = smov 128   ;;  %s219_s18 = smov 8  }
  0x16   :  { %31 = dma.hbm_to_vmem [thread:$0]  %s248_s1, 256, %s26_s12, [#allocation6], %s218_s17, %s218_s17, %s219_s18  }
  0x17   :  { %210 = dma.done.wait [#allocation3], 64  }
  0x18   :  { %211 = vsyncadd [#allocation3], 4294967232 }
  0x19   :  { %212 = dma.done.wait [#allocation6], 256  }
  0x1a   :  { %213 = vsyncadd [#allocation6], 4294967040  ;;  %v220_v0 = vmov 0.0   ;;  %vm221_vm0 = vmmov 0   ;;  %v40_v1 = vld [vmem:[#allocation5 + $0x8] sm:$0xff]  ;;  %v39_v2 = vld [vmem:[#allocation5] sm:$0xff] }
  0x1b   :  { %136 = vmatprep.subr.mxu0 %v220_v0  ;;  %140 = vmatprep.mubr.msk.f32.mxu0 %vm221_vm0, %v220_v0  ;;  %v38_v3 = vld [vmem:[#allocation2] sm:$0xf]  ;;  %vm41_vm1 = vcmask 130048   ;;  %s222_s0 = smov [#allocation7]  }
  0x1c   :  { %137 = vmatpush3.msra.mxu0 %v40_v1  ;;  %s122_s21 = sshll.u32 %s222_s0, 4  ;;  %s123_s21 = int_to_ptr.vmem [resolvable:$true] %s122_s21 }
  0x1d   :  { %138 = vmatprep.subr.mxu0 %v220_v0  ;;  %s190_s1 = scalar_lea.vmem %s123_s21, 64  ;;  %p195_p11 = scmp.lt.s32.totalorder %s123_s21, %s123_s21 }
  0x1e   :  { %139 = vmatpush3.msra.mxu0 %v39_v2  ;;  %p191_p10 = scmp.ne.s32.totalorder %s123_s21, %s190_s1  ;;  %p196_p12 = scmp.lt.s32.totalorder %s190_s1, %s190_s1 }
  0x1f   :  { %141 = vmatmul.mubr.msk.f32.vlgmr.msra.gmra.mxu0 %vm41_vm1, %v38_v3 }
  0x20   :  { %p197_p13 = por %p196_p12, %p195_p11 }
  0x22   :  { %p198_p0 = pnand %p197_p13, %p191_p10 }
  0xdf   :  { %v111_v4 = vpop.f32.mrf.mxu0 }
  0xe0   :  { %115 = vst [vmem:[#allocation7] sm:$0xf] %v111_v4 }
  0xe1   :  { %v142_v5 = vpop.f32.mrf.mxu0 }
  0xe2   :  { %201 = shalt.err (!%p198_p0)
}
  0xe3   :  { %125 = dma.vmem_to_hbm [thread:$0]  %s123_s21, 64, %s249_s2, [#allocation4]  }
  0xe4   :  { %214 = dma.done.wait [#allocation4], 64  }
  0xe5   :  { %215 = vsyncadd [#allocation4], 4294967232 }
  0xe6   :  { %129 = vsyncpa [#allocation3], 1 }
  0xe7   :  { %130 = vsyncpa [#allocation6], 1 }
  0xe8   :  { %131 = vsyncpa [#allocation4], 1 }

</bundles_post_ra>
